<compile_context>
chip_gen: v6e
topology: v6e:2x2x1
jax: 0.10.0
libtpu: 0.0.40
codegen_flags: <defaults>
</compile_context>

<pallas_src>
import jax
import jax.numpy as jnp
from jax.experimental import pallas as pl
from jax.experimental.pallas import tpu as pltpu

# ---- module hyper-params (CB(in_channel=4, out_channel=8, ksize=3)) -------------
N, CIN, H, W = 2, 4, 16, 16
COUT, KSIZE, STRIDE, DILATION, GROUPS = 8, 3, 1, 1, 1
PAD = int((KSIZE - 1) / 2) * DILATION          # padding as in CB.__init__
KKC = CIN * KSIZE * KSIZE                      # im2col contraction size (= 36)
HW = H * W
NHW = N * HW
BN_EPS = 1e-5


def cb_kernel(p_ref, w_ref, gamma_ref, beta_ref, out_ref):
    """Fused conv (single batched im2col matmul) + training-mode BatchNorm.

    p_ref    : (KKC, N*HW)  im2col patch matrix, bf16, VMEM (lanes = all pixels of the batch)
    w_ref    : (COUT, KKC)  conv weight flattened in (cin, kh, kw) order, bf16, VMEM
    gamma_ref: (COUT, 1)    BN weight, f32, VMEM
    beta_ref : (COUT, 1)    BN bias, f32, VMEM
    out_ref  : (N, COUT, HW) normalized output, f32, VMEM (lane dim = pixels)
    """
    # Single MXU matmul for the whole batch: (COUT, KKC) @ (KKC, N*HW) -> (COUT, N*HW).
    acc = jnp.dot(w_ref[...], p_ref[...], preferred_element_type=jnp.float32)

    # Fused BatchNorm2d (training mode, biased batch stats over N*H*W per channel):
    # one-pass stats with a single lane-axis reduce each, folded affine epilogue.
    inv_cnt = jnp.float32(1.0 / NHW)
    s = jnp.sum(acc, axis=-1, keepdims=True)                    # (COUT, 1)  XLU lane reduce
    sq = jnp.sum(acc * acc, axis=-1, keepdims=True)             # (COUT, 1)

    mean = s * inv_cnt
    var = jnp.maximum(sq * inv_cnt - mean * mean, 0.0)          # clamp: one-pass cancellation guard
    inv_std = jax.lax.rsqrt(var + BN_EPS)                       # EUP, effectively free

    scale = gamma_ref[...] * inv_std                            # (COUT, 1)
    shift = beta_ref[...] - mean * scale                        # (COUT, 1)
    y = (acc * scale + shift).astype(out_ref.dtype)             # (COUT, N*HW)

    # Per-image lane-aligned static slice stores (HW = 256, multiple of 128 -> unmasked).
    for n in range(N):
        out_ref[n] = y[:, n * HW:(n + 1) * HW]


@jax.jit
def cb_forward(x_nchw, weight_oihw, gamma, beta):
    """x_nchw: (N, CIN, H, W) -> (N, COUT, H, W), matching PyTorch CB.forward."""
    # im2col on a CIN-major view so the (cin,kh,kw) x (n,h,w) patch matrix reshapes
    # for free; everything here fuses into the jitted computation feeding pallas_call.
    xc = jnp.transpose(x_nchw.astype(jnp.bfloat16), (1, 0, 2, 3))   # (CIN, N, H, W)
    xp = jnp.pad(xc, ((0, 0), (0, 0), (PAD, PAD), (PAD, PAD)))
    taps = [xp[:, :, kh:kh + H, kw:kw + W]                          # each (CIN, N, H, W)
            for kh in range(KSIZE) for kw in range(KSIZE)]
    cols = jnp.stack(taps, axis=1)                                  # (CIN, K*K, N, H, W)
    patches = cols.reshape(KKC, NHW)                                # rows (cin,kh,kw), cols (n,h,w)

    # PyTorch weight (COUT, CIN, KH, KW) -> (COUT, CIN*K*K), same (cin, kh, kw) order.
    w2 = weight_oihw.reshape(COUT, KKC).astype(jnp.bfloat16)
    gamma2d = gamma.reshape(COUT, 1).astype(jnp.float32)
    beta2d = beta.reshape(COUT, 1).astype(jnp.float32)

    cost = pl.CostEstimate(
        flops=2 * COUT * KKC * NHW,
        transcendentals=COUT,
        bytes_accessed=(KKC * NHW * 2            # patches (bf16)
                        + COUT * KKC * 2         # weight (bf16)
                        + 2 * COUT * 4           # gamma + beta (f32)
                        + N * COUT * HW * 4))    # output (f32)

    out3 = pl.pallas_call(
        cb_kernel,
        out_shape=jax.ShapeDtypeStruct((N, COUT, HW), jnp.float32),
        in_specs=[pl.BlockSpec(memory_space=pltpu.MemorySpace.VMEM)] * 4,
        out_specs=pl.BlockSpec(memory_space=pltpu.MemorySpace.VMEM),
        cost_estimate=cost,
    )(patches, w2, gamma2d, beta2d)

    # Pure (free) reshape back to NCHW — no post-kernel transpose needed.
    return out3.reshape(N, COUT, H, W)


def reference_forward(x_nchw, weight_oihw, gamma, beta):
    """Pure-JAX f32 reference (conv + training-mode BN) for correctness check."""
    conv = jax.lax.conv_general_dilated(
        x_nchw.astype(jnp.float32), weight_oihw.astype(jnp.float32),
        window_strides=(STRIDE, STRIDE), padding=[(PAD, PAD), (PAD, PAD)],
        dimension_numbers=("NCHW", "OIHW", "NCHW"))
    mean = jnp.mean(conv, axis=(0, 2, 3), keepdims=True)
    var = jnp.mean((conv - mean) ** 2, axis=(0, 2, 3), keepdims=True)
    g = gamma.reshape(1, COUT, 1, 1)
    b = beta.reshape(1, COUT, 1, 1)
    return (conv - mean) * jax.lax.rsqrt(var + BN_EPS) * g + b


if __name__ == "__main__":
    key = jax.random.PRNGKey(0)
    kx, kw, kg, kb = jax.random.split(key, 4)

    # deterministic synthetic parameters (shapes per CB.__init__)
    x = jax.random.normal(kx, (N, CIN, H, W), dtype=jnp.float32)
    weight = jax.random.normal(kw, (COUT, CIN, KSIZE, KSIZE), dtype=jnp.float32) * 0.1
    gamma = 1.0 + 0.1 * jax.random.normal(kg, (COUT,), dtype=jnp.float32)
    beta = 0.1 * jax.random.normal(kb, (COUT,), dtype=jnp.float32)

    out = cb_forward(x, weight, gamma, beta)
    out = jax.block_until_ready(out)

    ref = reference_forward(x, weight, gamma, beta)
    assert out.shape == (N, COUT, H, W)
    # bf16 MXU operands vs f32 reference -> relaxed tolerance.
    assert jnp.allclose(out, ref, atol=5e-2, rtol=5e-2), "mismatch vs reference"

    print("KERNEL_OK")
</pallas_src>

<mosaic_0001>
module attributes {stable_mosaic.version = 11 : i64} {
  func.func @cb_kernel(%arg0: memref<36x512xbf16, #tpu.memory_space<vmem>>, %arg1: memref<8x36xbf16, #tpu.memory_space<vmem>>, %arg2: memref<8x1xf32, #tpu.memory_space<vmem>>, %arg3: memref<8x1xf32, #tpu.memory_space<vmem>>, %arg4: memref<2x8x256xf32, #tpu.memory_space<vmem>>) attributes {dimension_semantics = [], scalar_prefetch = 0 : i64, scratch_operands = 0 : i64, tpu.core_type = #tpu.core_type<tc>} {
    %c0 = arith.constant 0 : index
    %c0_0 = arith.constant 0 : index
    %0 = vector.load %arg1[%c0, %c0_0] : memref<8x36xbf16, #tpu.memory_space<vmem>>, vector<8x36xbf16>
    %c0_1 = arith.constant 0 : index
    %c0_2 = arith.constant 0 : index
    %1 = vector.load %arg0[%c0_1, %c0_2] : memref<36x512xbf16, #tpu.memory_space<vmem>>, vector<36x512xbf16>
    %cst = arith.constant dense<0.000000e+00> : vector<8x512xf32>
    %2 = tpu.matmul %0, %1, %cst {dimension_numbers = #tpu.dot_dimension_numbers<[1], [0], [0], [1], [0, 0, 1, 1], [], []>} : vector<8x36xbf16>, vector<36x512xbf16>, vector<8x512xf32> -> vector<8x512xf32>
    %cst_3 = arith.constant dense<0.000000e+00> : vector<8xf32>
    %3 = vector.multi_reduction <add>, %2, %cst_3 [1] : vector<8x512xf32> to vector<8xf32>
    %4 = vector.shape_cast %3 : vector<8xf32> to vector<8x1xf32>
    %5 = arith.mulf %2, %2 : vector<8x512xf32>
    %cst_4 = arith.constant dense<0.000000e+00> : vector<8xf32>
    %6 = vector.multi_reduction <add>, %5, %cst_4 [1] : vector<8x512xf32> to vector<8xf32>
    %7 = vector.shape_cast %6 : vector<8xf32> to vector<8x1xf32>
    %cst_5 = arith.constant 0.001953125 : f32
    %8 = vector.broadcast %cst_5 : f32 to vector<8x1xf32>
    %9 = arith.mulf %4, %8 : vector<8x1xf32>
    %cst_6 = arith.constant 0.001953125 : f32
    %10 = vector.broadcast %cst_6 : f32 to vector<8x1xf32>
    %11 = arith.mulf %7, %10 : vector<8x1xf32>
    %12 = arith.mulf %9, %9 : vector<8x1xf32>
    %13 = arith.subf %11, %12 : vector<8x1xf32>
    %cst_7 = arith.constant 0.000000e+00 : f32
    %14 = vector.broadcast %cst_7 : f32 to vector<8x1xf32>
    %15 = arith.maximumf %13, %14 : vector<8x1xf32>
    %cst_8 = arith.constant 9.99999974E-6 : f32
    %16 = vector.broadcast %cst_8 : f32 to vector<8x1xf32>
    %17 = arith.addf %15, %16 : vector<8x1xf32>
    %18 = math.rsqrt %17 : vector<8x1xf32>
    %c0_9 = arith.constant 0 : index
    %c0_10 = arith.constant 0 : index
    %19 = vector.load %arg2[%c0_9, %c0_10] : memref<8x1xf32, #tpu.memory_space<vmem>>, vector<8x1xf32>
    %20 = arith.mulf %19, %18 : vector<8x1xf32>
    %c0_11 = arith.constant 0 : index
    %c0_12 = arith.constant 0 : index
    %21 = vector.load %arg3[%c0_11, %c0_12] : memref<8x1xf32, #tpu.memory_space<vmem>>, vector<8x1xf32>
    %22 = arith.mulf %9, %20 : vector<8x1xf32>
    %23 = arith.subf %21, %22 : vector<8x1xf32>
    %24 = vector.broadcast %20 : vector<8x1xf32> to vector<8x512xf32>
    %25 = arith.mulf %2, %24 : vector<8x512xf32>
    %26 = vector.broadcast %23 : vector<8x1xf32> to vector<8x512xf32>
    %27 = arith.addf %25, %26 : vector<8x512xf32>
    %28 = vector.extract_strided_slice %27 {offsets = [0, 0], sizes = [8, 256], strides = [1, 1]} : vector<8x512xf32> to vector<8x256xf32>
    %c0_13 = arith.constant 0 : index
    %c0_14 = arith.constant 0 : index
    %c0_15 = arith.constant 0 : index
    %29 = vector.load %arg4[%c0_13, %c0_14, %c0_15] : memref<2x8x256xf32, #tpu.memory_space<vmem>>, vector<1x8x256xf32>
    %30 = vector.shape_cast %29 : vector<1x8x256xf32> to vector<8x256xf32>
    %31 = vector.shape_cast %28 : vector<8x256xf32> to vector<1x8x256xf32>
    tpu.vector_store %arg4[%c0_13, %c0_14, %c0_15], %31 {strides = array<i32>} : memref<2x8x256xf32, #tpu.memory_space<vmem>>, vector<1x8x256xf32>,
    %32 = vector.extract_strided_slice %27 {offsets = [0, 256], sizes = [8, 256], strides = [1, 1]} : vector<8x512xf32> to vector<8x256xf32>
    %c1 = arith.constant 1 : index
    %c0_16 = arith.constant 0 : index
    %c0_17 = arith.constant 0 : index
    %33 = vector.load %arg4[%c1, %c0_16, %c0_17] : memref<2x8x256xf32, #tpu.memory_space<vmem>>, vector<1x8x256xf32>
    %34 = vector.shape_cast %33 : vector<1x8x256xf32> to vector<8x256xf32>
    %35 = vector.shape_cast %32 : vector<8x256xf32> to vector<1x8x256xf32>
    tpu.vector_store %arg4[%c1, %c0_16, %c0_17], %35 {strides = array<i32>} : memref<2x8x256xf32, #tpu.memory_space<vmem>>, vector<1x8x256xf32>,
    return
  }
}

</mosaic_0001>

<bundles_post_ra>
// kernel: cb_forward.1
= control target key start
LH: loop header
LB: loop body
LE: loop exit
PB: predicated region body
PF: predicated region fallthrough
CT: control target
= control target key end

     0   :  { %vm83_vm0 = vcmask 1041408   ;;  %v270_v2 = vmov 0   ;;  %vm79_vm1 = vcmask 293888   ;;  %s351_s0 = inlined_call_operand.vmem [shape: bf16[36,512], index: 0, kind: input, shape index: {}]   ;;  %s352_s1 = inlined_call_operand.vmem [shape: bf16[8,36], index: 1, kind: input, shape index: {}]   ;;  %s353_s2 = inlined_call_operand.vmem [shape: f32[8,1], index: 2, kind: input, shape index: {}]   ;;  %s354_s3 = inlined_call_operand.vmem [shape: f32[8,1], index: 3, kind: input, shape index: {}]   ;;  %s355_s4 = inlined_call_operand.vmem [shape: f32[2,8,256], index: 4, kind: output, shape index: {}]  }
   0x1   :  { %v27_v0 = vld [vmem:[%s351_s0 + $0x40] sm:$0x33]  ;;  %v28_v1 = vld [vmem:[%s351_s0 + $0x48] sm:$0x33]  ;;  %128 = vmatprep.mubr.bf16.mxu0 %v270_v2  ;;  %169 = vmatprep.mubr.bf16.mxu1 %v270_v2 }
   0x2   :  { %v240_v3 = vcombine.high %v27_v0, %v27_v0  ;;  %v242_v4 = vcombine.high %v28_v1, %v28_v1  ;;  %v239_v5 = vcombine.low %v27_v0, %v27_v0  ;;  %v241_v6 = vcombine.low %v28_v1, %v28_v1  ;;  %v256_v7 = vld [vmem:[%s351_s0 + $0x24] ss:$16 sps:$4 sm:$0xff]   ;;  %250 = vset.pattern.permute.xlu1 %v270_v2  ;;  %v258_v8 = vld [vmem:[%s351_s0 + $0x2c] ss:$16 sps:$4 sm:$0xff]   ;;  %v260_v11 = vld [vmem:[%s351_s0 + $0x20] ss:$16 sps:$4 sm:$0xff]  }
   0x3   :  { %251 = vset.pattern.permute.xlu0 %v270_v2  ;;  %v261_v12 = vld [vmem:[%s351_s0 + $0x28] ss:$16 sps:$4 sm:$0xff]   ;;  %v262_v13 = vld [vmem:[%s351_s0 + $0x4] ss:$16 sps:$4 sm:$0xff]   ;;  %v264_v14 = vld [vmem:[%s351_s0 + $0xc] ss:$16 sps:$4 sm:$0xff]  }
   0x4   :  { %243 = vmatprep.subr.msk.bf16.mxu0 %vm83_vm0, %v240_v3  ;;  %245 = vmatprep.subr.msk.bf16.mxu1 %vm83_vm0, %v242_v4  ;;  %v85_v9 = vsel %vm83_vm0, %v239_v5, 0  ;;  %v91_v10 = vsel %vm83_vm0, %v241_v6, 0  ;;  %v266_v15 = vld [vmem:[%s351_s0] ss:$16 sps:$4 sm:$0xff]   ;;  %v267_v16 = vld [vmem:[%s351_s0 + $0x8] ss:$16 sps:$4 sm:$0xff]  }
   0x5   :  { %107 = vmatpush1.bf16.msra.mxu0 %v85_v9  ;;  %148 = vmatpush1.bf16.msra.mxu1 %v91_v10  ;;  %v18_v17 = vld [vmem:[%s352_s1] sm:$0xf] }
   0x6   :  { %108 = vmatprep.subr.bf16.mxu0 %v256_v7  ;;  %149 = vmatprep.subr.bf16.mxu1 %v258_v8  ;;  %v199_v44 = vld [vmem:[%s353_s2] sm:$0xff] }
   0x7   :  { %v201_v47 = vld [vmem:[%s354_s3] sm:$0xff] }
   0x9   :  { %109 = vmatpush1.bf16.msra.mxu0 %v260_v11  ;;  %150 = vmatpush1.bf16.msra.mxu1 %v261_v12 }
   0xa   :  { %110 = vmatprep.subr.bf16.mxu0 %v262_v13  ;;  %151 = vmatprep.subr.bf16.mxu1 %v264_v14 }
   0xd   :  { %111 = vmatpush1.bf16.msra.mxu0 %v266_v15  ;;  %152 = vmatpush1.bf16.msra.mxu1 %v267_v16 }
  0x10   :  { %244 = vmatmul.mubr.msk.bf16.vlgmr.msra.gmra.mxu0 %vm79_vm1, %v18_v17  ;;  %246 = vmatmul.mubr.msk.bf16.vlgmr.msra.gmra.mxu1 %vm79_vm1, %v18_v17 }
  0xd0   :  { %v130_v18 = vpop.f32.mrf.mxu0  ;;  %v171_v19 = vpop.f32.mrf.mxu1 }
  0xd1   :  { %v183_v22 = vmul.f32 %v130_v18, %v130_v18  ;;  %v185_v23 = vmul.f32 %v171_v19, %v171_v19 }
  0xd2   :  { %v132_v20 = vpop.f32.mrf.mxu0  ;;  %v173_v21 = vpop.f32.mrf.mxu1 }
  0xd3   :  { %v178_v24 = vadd.f32 %v132_v20, %v130_v18  ;;  %v184_v25 = vmul.f32 %v132_v20, %v132_v20  ;;  %v186_v34 = vmul.f32 %v173_v21, %v173_v21 }
  0xd4   :  { %v134_v26 = vpop.f32.mrf.mxu0  ;;  %v175_v27 = vpop.f32.mrf.mxu1 }
  0xd5   :  { %v179_v28 = vadd.f32 %v178_v24, %v171_v19  ;;  %v187_v29 = vadd.f32 %v184_v25, %v183_v22 }
  0xd6   :  { %v135_v30 = vpop.f32.mrf.mxu0  ;;  %v176_v31 = vpop.f32.mrf.mxu1 }
  0xd7   :  { %v180_v32 = vadd.f32 %v179_v28, %v173_v21  ;;  %v188_v33 = vadd.f32 %v187_v29, %v185_v23 }
  0xd9   :  { %181 = vadd.xlane.f32.xlu0 %v180_v32  ;;  %v189_v35 = vadd.f32 %v188_v33, %v186_v34 }
  0xdd   :  { %190 = vadd.xlane.f32.xlu0 %v189_v35 }
 0x162   :  { %v182_v36 = vpop.xlane.xlu0 %181 }
 0x163   :  { %v192_v37 = vmul.f32 0.001953125, %v182_v36 }
 0x165   :  { %v194_v39 = vmul.f32 %v192_v37, %v192_v37 }
 0x166   :  { %v191_v38 = vpop.xlane.xlu0 %190 }
 0x167   :  { %v193_v40 = vmul.f32 0.001953125, %v191_v38 }
 0x169   :  { %v195_v41 = vsub.f32 %v193_v40, %v194_v39 }
 0x16b   :  { %v196_v42 = vmax.f32 %v195_v41, 0.0 }
 0x16d   :  { %v197_v43 = vadd.f32 1e-05, %v196_v42 }
 0x16f   :  { %268 = vrsqrt.f32 %v197_v43 }
 0x17c   :  { %v269_v45 = vpop.eup %268 }
 0x17d   :  { %v200_v46 = vmul.f32 %v269_v45, %v199_v44 }
 0x17f   :  { %206 = vperm.xlu1 %250, %v200_v46   ;;  %v202_v48 = vmul.f32 %v200_v46, %v192_v37 }
 0x181   :  { %v203_v49 = vsub.f32 %v201_v47, %v202_v48 }
 0x183   :  { %215 = vperm.xlu1 %250, %v203_v49  }
 0x1fa   :  { %v207_v50 = vpop.permute.xlu1 %206 }
 0x1fb   :  { %v209_v51 = vmul.f32 %v207_v50, %v130_v18  ;;  %v210_v52 = vmul.f32 %v207_v50, %v132_v20  ;;  %v211_v53 = vmul.f32 %v207_v50, %v171_v19  ;;  %v212_v54 = vmul.f32 %v207_v50, %v173_v21 }
 0x1fe   :  { %v216_v55 = vpop.permute.xlu1 %215 }
 0x1ff   :  { %v218_v56 = vadd.f32 %v216_v55, %v209_v51  ;;  %v219_v57 = vadd.f32 %v216_v55, %v210_v52  ;;  %v220_v58 = vadd.f32 %v216_v55, %v211_v53  ;;  %v221_v59 = vadd.f32 %v216_v55, %v212_v54 }
 0x201   :  { %222 = vst [vmem:[%s355_s4] sm:$0xff] %v218_v56  ;;  %223 = vst [vmem:[%s355_s4 + $0x8] sm:$0xff] %v219_v57 }
 0x202   :  { %247 = vst [vmem:[%s355_s4 + $0x10] sm:$0xff] %v220_v58  ;;  %248 = vst [vmem:[%s355_s4 + $0x18] sm:$0xff] %v221_v59 }

</bundles_post_ra>
